<compile_context>
chip_gen: v7x
topology: tpu7x:2x2x1
jax: 0.10.0
libtpu: 0.0.40
codegen_flags: <defaults>
</compile_context>

<pallas_src>
import functools
import math

import jax
import jax.numpy as jnp
from jax import lax
from jax.experimental import pallas as pl
from jax.experimental.pallas import tpu as pltpu


def _pick_block(n, target):
    """Largest power-of-two tile <= target that divides n (>= 8), else n."""
    if n <= target:
        return n
    b = target
    while b >= 8:
        if n % b == 0:
            return b
        b //= 2
    return n


def _vmem_limit_bytes():
    # v5e/v6e have 128 MiB physical VMEM -> allow up to ~96 MiB scoped;
    # v7x has 64 MiB -> stay at ~48 MiB.  Fallback is the v7x-safe number.
    try:
        cap = pltpu.get_tpu_info().vmem_capacity_bytes
    except Exception:
        cap = 64 * 1024 * 1024
    return int(min(cap * 3 // 4, 96 * 1024 * 1024))


# ---------------------------------------------------------------------------
# Pass 1: fused qkv projection  (x @ W_qkv + b_qkv), bf16 MXU, f32 accumulate.
# Grid = (B, T/block_t, 3C/block_n); x block is resident across the n sweep.
# ---------------------------------------------------------------------------
def qkv_proj_kernel(x_ref, w_ref, b_ref, qkv_ref):
    acc = jnp.dot(x_ref[...], w_ref[...], preferred_element_type=jnp.float32)
    qkv_ref[...] = (acc + b_ref[...]).astype(qkv_ref.dtype)


# ---------------------------------------------------------------------------
# Pass 2: flash attention with K/V resident per (batch, head), in-kernel
# causal loop over kv chunks, out-projection fused as a per-head accumulation.
# Grid = (B, q_tiles, heads); head axis is "arbitrary" (accumulates into oacc).
# ---------------------------------------------------------------------------
def flash_attn_kernel(q_ref, k_ref, v_ref, wp_ref, bp_ref, o_ref,
                      m_ref, l_ref, acc_ref, oacc_ref, *, block_k):
    qt = pl.program_id(1)
    h = pl.program_id(2)
    n_h = pl.num_programs(2)

    # New (batch, q-tile) group: seed the fused out-proj accumulator with bias.
    @pl.when(h == 0)
    def _():
        oacc_ref[...] = jnp.broadcast_to(bp_ref[...], oacc_ref.shape)

    # Reset the per-head online-softmax state.
    m_ref[...] = jnp.full(m_ref.shape, -jnp.inf, jnp.float32)
    l_ref[...] = jnp.zeros(l_ref.shape, jnp.float32)
    acc_ref[...] = jnp.zeros(acc_ref.shape, jnp.float32)

    q = q_ref[...]                                    # (block_q, hd) bf16, pre-scaled

    def process_chunk(kt, masked):
        k0 = pl.multiple_of(kt * block_k, block_k)
        k = k_ref[pl.ds(k0, block_k), :]              # (block_k, hd) bf16
        v = v_ref[pl.ds(k0, block_k), :]              # (block_k, hd) bf16
        s = jnp.dot(q, k.T, preferred_element_type=jnp.float32)   # (bq, bk) f32
        if masked:
            # Diagonal chunk only; block_q == block_k so local iotas suffice.
            row = lax.broadcasted_iota(jnp.int32, s.shape, 0)
            col = lax.broadcasted_iota(jnp.int32, s.shape, 1)
            s = jnp.where(row >= col, s, -jnp.inf)
        m_prev = m_ref[...]
        m_new = jnp.maximum(m_prev, jnp.max(s, axis=-1, keepdims=True))
        alpha = jnp.exp(m_prev - m_new)
        # TODO(synk): on v6e/v7x a bf16 exp (EUP) would roughly double
        # transcendental throughput; kept f32 for v5e portability.
        p = jnp.exp(s - m_new)
        l_ref[...] = alpha * l_ref[...] + jnp.sum(p, axis=-1, keepdims=True)
        acc_ref[...] = alpha * acc_ref[...] + jnp.dot(
            p.astype(v.dtype), v, preferred_element_type=jnp.float32)
        m_ref[...] = m_new

    # Strictly-below-diagonal kv chunks: unmasked, causal trip count (qt chunks).
    def body(kt, carry):
        process_chunk(kt, masked=False)
        return carry

    lax.fori_loop(0, qt, body, 0)

    # Diagonal chunk (the only one that needs the causal mask).
    process_chunk(qt, masked=True)

    # Normalize and accumulate y_h @ Wproj_h (weights resident, per-head slab).
    y_h = acc_ref[...] * pl.reciprocal(l_ref[...], approx=True)
    wp_h = wp_ref[h]                                   # (hd, C) bf16
    oacc_ref[...] += jnp.dot(y_h.astype(wp_h.dtype), wp_h,
                             preferred_element_type=jnp.float32)

    # Last head: one lane-dense slab store of the (block_q, C) output tile.
    @pl.when(h == n_h - 1)
    def _():
        o_ref[...] = oacc_ref[...].astype(o_ref.dtype)


# ---------------------------------------------------------------------------
# Wrapper
# ---------------------------------------------------------------------------
def causal_self_attention(x, w_attn, b_attn, w_proj, b_proj, n_head,
                          *, block_t=None, block_q=None, block_k=None,
                          block_n=None):
    """x: (B, T, C); w_attn: (3C, C); b_attn: (3C,); w_proj: (C, C); b_proj: (C,).
    Weights are in PyTorch nn.Linear layout (out_features, in_features)."""
    B, T, C = x.shape
    assert C % n_head == 0
    hd = C // n_head
    scale = 1.0 / math.sqrt(hd)

    block_t = block_t or _pick_block(T, 512)
    if block_q is None:
        block_q = _pick_block(T, 512)
        if B == 1 and T // block_q < 2:
            # v7x megacore: keep >= 2 parallel (batch, q-tile) groups.
            block_q = _pick_block(T, max(8, T // 2))
    block_k = block_k or block_q
    block_n = block_n or _pick_block(3 * C, 1536)
    assert T % block_t == 0 and T % block_q == 0 and T % block_k == 0
    assert (3 * C) % block_n == 0
    assert block_q == block_k, "causal diagonal masking assumes square score tiles"

    vmem_limit = _vmem_limit_bytes()

    # ---- weight prep (pre-transpose to (in, out); fold score scale into q) ----
    w_qkv = w_attn.T.astype(jnp.float32)                          # (C, 3C)
    col_scale = jnp.concatenate(
        [jnp.full((C,), scale, jnp.float32), jnp.ones((2 * C,), jnp.float32)])
    w_qkv_bf = (w_qkv * col_scale[None, :]).astype(jnp.bfloat16)
    b_qkv = (b_attn.astype(jnp.float32) * col_scale).reshape(1, 3 * C)

    # Out-proj weights pre-split per head: (n_head, hd, C), bf16, held resident.
    w_out_heads = (w_proj.T.astype(jnp.float32)
                   .reshape(n_head, hd, C).astype(jnp.bfloat16))
    b_out = b_proj.astype(jnp.float32).reshape(1, C)

    x_bf = x.astype(jnp.bfloat16)

    # ---- Pass 1: qkv projection (3C tiled so the weight block stays small) ---
    cost_a = pl.CostEstimate(
        flops=2 * B * T * C * 3 * C,
        transcendentals=0,
        bytes_accessed=B * T * C * 2 + C * 3 * C * 2 + 3 * C * 4
                       + B * T * 3 * C * 2)
    qkv = pl.pallas_call(
        qkv_proj_kernel,
        out_shape=jax.ShapeDtypeStruct((B, T, 3 * C), jnp.bfloat16),
        grid=(B, T // block_t, (3 * C) // block_n),
        in_specs=[
            pl.BlockSpec((pl.Squeezed(), block_t, C), lambda b, t, n: (b, t, 0)),
            pl.BlockSpec((C, block_n), lambda b, t, n: (0, n)),
            pl.BlockSpec((1, block_n), lambda b, t, n: (0, n)),
        ],
        out_specs=pl.BlockSpec((pl.Squeezed(), block_t, block_n),
                               lambda b, t, n: (b, t, n)),
        compiler_params=pltpu.CompilerParams(
            dimension_semantics=("parallel", "parallel", "parallel"),
            vmem_limit_bytes=vmem_limit),
        cost_estimate=cost_a,
    )(x_bf, w_qkv_bf, b_qkv)

    # ---- layout plumbing: (B,T,3C) -> (3, B, n_head, T, hd) -------------------
    # Known trade-off: one extra qkv HBM round-trip, in exchange for contiguous
    # (T, hd) K/V DMAs in pass 2 (untransposed layout would need hd*2-byte
    # strided rows).
    qkv5 = qkv.reshape(B, T, 3, n_head, hd).transpose(2, 0, 3, 1, 4)

    # ---- Pass 2: flash attention + fused out-projection -----------------------
    n_qt = T // block_q
    q_block = (pl.Squeezed(), pl.Squeezed(), pl.Squeezed(), block_q, hd)
    kv_block = (pl.Squeezed(), pl.Squeezed(), pl.Squeezed(), T, hd)

    cost_b = pl.CostEstimate(
        flops=2 * B * n_head * T * T * hd + 2 * B * T * C * C,
        transcendentals=B * n_head * T * T // 2,
        bytes_accessed=(B * T * C * 2                      # q
                        + 2 * B * n_qt * n_head * T * hd * 2  # K/V per (b,qt,h)
                        + C * C * 2 + C * 4                 # resident weights
                        + B * T * C * 4))                   # output

    kernel = functools.partial(flash_attn_kernel, block_k=block_k)
    out = pl.pallas_call(
        kernel,
        out_shape=jax.ShapeDtypeStruct((B, T, C), x.dtype),
        grid=(B, n_qt, n_head),
        in_specs=[
            pl.BlockSpec(q_block, lambda b, qt, h: (0, b, h, qt, 0)),    # q tile
            pl.BlockSpec(kv_block, lambda b, qt, h: (1, b, h, 0, 0)),    # K (full T)
            pl.BlockSpec(kv_block, lambda b, qt, h: (2, b, h, 0, 0)),    # V (full T)
            pl.BlockSpec((n_head, hd, C), lambda b, qt, h: (0, 0, 0)),   # W_proj (resident)
            pl.BlockSpec((1, C), lambda b, qt, h: (0, 0)),               # b_proj
        ],
        out_specs=pl.BlockSpec((pl.Squeezed(), block_q, C),
                               lambda b, qt, h: (b, qt, 0)),
        scratch_shapes=[
            pltpu.VMEM((block_q, 1), jnp.float32),     # m: running max
            pltpu.VMEM((block_q, 1), jnp.float32),     # l: running denom
            pltpu.VMEM((block_q, hd), jnp.float32),    # per-head attention acc
            pltpu.VMEM((block_q, C), jnp.float32),     # fused out-proj acc
        ],
        compiler_params=pltpu.CompilerParams(
            dimension_semantics=("parallel", "parallel", "arbitrary"),
            vmem_limit_bytes=vmem_limit),
        cost_estimate=cost_b,
    )(qkv5, qkv5, qkv5, w_out_heads, b_out)
    return out


# ---------------------------------------------------------------------------
# Pure-JAX reference matching the PyTorch forward (f32).
# ---------------------------------------------------------------------------
def _reference(x, w_attn, b_attn, w_proj, b_proj, n_head):
    B, T, C = x.shape
    hd = C // n_head
    qkv = jnp.einsum("btc,dc->btd", x, w_attn) + b_attn
    q, k, v = jnp.split(qkv, 3, axis=-1)

    def heads(t):
        return t.reshape(B, T, n_head, hd).transpose(0, 2, 1, 3)

    q, k, v = heads(q), heads(k), heads(v)
    att = jnp.einsum("bhqd,bhkd->bhqk", q, k) / math.sqrt(hd)
    mask = jnp.tril(jnp.ones((T, T), bool))
    att = jnp.where(mask, att, -jnp.inf)
    att = jax.nn.softmax(att, axis=-1)
    y = jnp.einsum("bhqk,bhkd->bhqd", att, v)
    y = y.transpose(0, 2, 1, 3).reshape(B, T, C)
    return jnp.einsum("btc,dc->btd", y, w_proj) + b_proj


if __name__ == "__main__":
    # Small config: B=2, T=16 (block_size >= 16), n_embd=32, n_head=4 -> hd=8.
    # block_q=block_k=8 forces 2 q-tiles, so the in-kernel causal fori_loop,
    # the masked diagonal chunk, and the per-head accumulation are exercised.
    B, T, C, n_head = 2, 16, 32, 4

    key = jax.random.PRNGKey(0)
    kx, kwa, kba, kwp, kbp = jax.random.split(key, 5)

    x = jax.random.normal(kx, (B, T, C), dtype=jnp.float32)
    w_attn = jax.random.normal(kwa, (3 * C, C), dtype=jnp.float32) * 0.02
    b_attn = jax.random.normal(kba, (3 * C,), dtype=jnp.float32) * 0.02
    w_proj = jax.random.normal(kwp, (C, C), dtype=jnp.float32) * 0.02
    b_proj = jax.random.normal(kbp, (C,), dtype=jnp.float32) * 0.02

    fn = jax.jit(functools.partial(causal_self_attention, n_head=n_head,
                                   block_q=8, block_k=8))
    out = jax.block_until_ready(fn(x, w_attn, b_attn, w_proj, b_proj))

    ref = _reference(x, w_attn, b_attn, w_proj, b_proj, n_head)
    assert out.shape == ref.shape
    assert bool(jnp.all(jnp.isfinite(out)))
    max_err = float(jnp.max(jnp.abs(out - ref)))
    # bf16 matmul inputs with f32 accumulation -> loose-but-meaningful tolerance.
    assert jnp.allclose(out, ref, atol=5e-3, rtol=5e-2), f"max abs err {max_err}"

    print("KERNEL_OK")
</pallas_src>

<mosaic_0001>
module attributes {stable_mosaic.version = 11 : i64} {
  func.func @qkv_proj_kernel(%arg0: i32, %arg1: i32, %arg2: i32, %arg3: memref<1x16x32xbf16, #tpu.memory_space<vmem>>, %arg4: memref<32x96xbf16, #tpu.memory_space<vmem>>, %arg5: memref<1x96xf32, #tpu.memory_space<vmem>>, %arg6: memref<1x16x96xbf16, #tpu.memory_space<vmem>>) attributes {dimension_semantics = [#tpu.dimension_semantics<parallel>, #tpu.dimension_semantics<parallel>, #tpu.dimension_semantics<parallel>], iteration_bounds = array<i64: 2, 1, 1>, scalar_prefetch = 0 : i64, scratch_operands = 0 : i64, tpu.core_type = #tpu.core_type<tc>, window_params = [{transform_indices = @transform_0, window_bounds = array<i64: 1, 16, 32>}, {transform_indices = @transform_1, window_bounds = array<i64: 32, 96>}, {transform_indices = @transform_2, window_bounds = array<i64: 1, 96>}, {transform_indices = @transform_3, window_bounds = array<i64: 1, 16, 96>}]} {
    %c0 = arith.constant 0 : index
    %c0_0 = arith.constant 0 : index
    %c0_1 = arith.constant 0 : index
    %0 = vector.load %arg3[%c0, %c0_0, %c0_1] : memref<1x16x32xbf16, #tpu.memory_space<vmem>>, vector<1x16x32xbf16>
    %1 = vector.shape_cast %0 : vector<1x16x32xbf16> to vector<16x32xbf16>
    %c0_2 = arith.constant 0 : index
    %c0_3 = arith.constant 0 : index
    %2 = vector.load %arg4[%c0_2, %c0_3] : memref<32x96xbf16, #tpu.memory_space<vmem>>, vector<32x96xbf16>
    %cst = arith.constant dense<0.000000e+00> : vector<16x96xf32>
    %3 = tpu.matmul %1, %2, %cst {dimension_numbers = #tpu.dot_dimension_numbers<[1], [0], [0], [1], [0, 0, 1, 1], [], []>} : vector<16x32xbf16>, vector<32x96xbf16>, vector<16x96xf32> -> vector<16x96xf32>
    %c0_4 = arith.constant 0 : index
    %c0_5 = arith.constant 0 : index
    %4 = vector.load %arg5[%c0_4, %c0_5] : memref<1x96xf32, #tpu.memory_space<vmem>>, vector<1x96xf32>
    %5 = vector.broadcast %4 : vector<1x96xf32> to vector<16x96xf32>
    %6 = arith.addf %3, %5 : vector<16x96xf32>
    %7 = arith.truncf %6 : vector<16x96xf32> to vector<16x96xbf16>
    %c0_6 = arith.constant 0 : index
    %c0_7 = arith.constant 0 : index
    %c0_8 = arith.constant 0 : index
    %8 = vector.load %arg6[%c0_6, %c0_7, %c0_8] : memref<1x16x96xbf16, #tpu.memory_space<vmem>>, vector<1x16x96xbf16>
    %9 = vector.shape_cast %8 : vector<1x16x96xbf16> to vector<16x96xbf16>
    %10 = vector.shape_cast %7 : vector<16x96xbf16> to vector<1x16x96xbf16>
    tpu.vector_store %arg6[%c0_6, %c0_7, %c0_8], %10 {strides = array<i32>} : memref<1x16x96xbf16, #tpu.memory_space<vmem>>, vector<1x16x96xbf16>,
    return
  }
  func.func @transform_0(%arg0: i32, %arg1: i32, %arg2: i32) -> (i32, i32, i32) {
    %c0_i32 = arith.constant 0 : i32
    %c0_i32_0 = arith.constant 0 : i32
    return %arg0, %arg1, %c0_i32 : i32, i32, i32
  }
  func.func @transform_1(%arg0: i32, %arg1: i32, %arg2: i32) -> (i32, i32) {
    %c0_i32 = arith.constant 0 : i32
    %c0_i32_0 = arith.constant 0 : i32
    return %c0_i32, %arg2 : i32, i32
  }
  func.func @transform_2(%arg0: i32, %arg1: i32, %arg2: i32) -> (i32, i32) {
    %c0_i32 = arith.constant 0 : i32
    %c0_i32_0 = arith.constant 0 : i32
    return %c0_i32, %arg2 : i32, i32
  }
  func.func @transform_3(%arg0: i32, %arg1: i32, %arg2: i32) -> (i32, i32, i32) {
    %c0_i32 = arith.constant 0 : i32
    return %arg0, %arg1, %arg2 : i32, i32, i32
  }
}

module attributes {stable_mosaic.version = 11 : i64} {
  func.func @flash_attn_kernel(%arg0: i32, %arg1: i32, %arg2: i32, %arg3: memref<1x1x1x8x8xbf16, #tpu.memory_space<vmem>>, %arg4: memref<1x1x1x16x8xbf16, #tpu.memory_space<vmem>>, %arg5: memref<1x1x1x16x8xbf16, #tpu.memory_space<vmem>>, %arg6: memref<4x8x32xbf16, #tpu.memory_space<vmem>>, %arg7: memref<1x32xf32, #tpu.memory_space<vmem>>, %arg8: memref<1x8x32xf32, #tpu.memory_space<vmem>>, %arg9: memref<8x1xf32, #tpu.memory_space<vmem>>, %arg10: memref<8x1xf32, #tpu.memory_space<vmem>>, %arg11: memref<8x8xf32, #tpu.memory_space<vmem>>, %arg12: memref<8x32xf32, #tpu.memory_space<vmem>>) attributes {dimension_semantics = [#tpu.dimension_semantics<parallel>, #tpu.dimension_semantics<parallel>, #tpu.dimension_semantics<arbitrary>], iteration_bounds = array<i64: 2, 2, 4>, scalar_prefetch = 0 : i64, scratch_operands = 4 : i64, tpu.core_type = #tpu.core_type<tc>, window_params = [{transform_indices = @transform_0, window_bounds = array<i64: 1, 1, 1, 8, 8>}, {transform_indices = @transform_1, window_bounds = array<i64: 1, 1, 1, 16, 8>}, {transform_indices = @transform_2, window_bounds = array<i64: 1, 1, 1, 16, 8>}, {pipeline_mode = #tpu.pipeline_mode<synchronous>, transform_indices = @transform_3, window_bounds = array<i64: 4, 8, 32>}, {pipeline_mode = #tpu.pipeline_mode<synchronous>, transform_indices = @transform_4, window_bounds = array<i64: 1, 32>}, {transform_indices = @transform_5, window_bounds = array<i64: 1, 8, 32>}]} {
    %c0_i32 = arith.constant 0 : i32
    %0 = arith.cmpi eq, %arg2, %c0_i32 : i32
    %1 = arith.extui %0 : i1 to i32
    %c0_i32_0 = arith.constant 0 : i32
    %2 = arith.cmpi ne, %1, %c0_i32_0 : i32
    scf.if %2 {
      %c0_52 = arith.constant 0 : index
      %c0_53 = arith.constant 0 : index
      %67 = vector.load %arg7[%c0_52, %c0_53] : memref<1x32xf32, #tpu.memory_space<vmem>>, vector<1x32xf32>
      %68 = vector.shape_cast %67 : vector<1x32xf32> to vector<1x32xf32>
      %69 = vector.broadcast %68 : vector<1x32xf32> to vector<8x32xf32>
      %c0_54 = arith.constant 0 : index
      %c0_55 = arith.constant 0 : index
      %70 = vector.load %arg12[%c0_54, %c0_55] : memref<8x32xf32, #tpu.memory_space<vmem>>, vector<8x32xf32>
      tpu.vector_store %arg12[%c0_54, %c0_55], %69 {strides = array<i32>} : memref<8x32xf32, #tpu.memory_space<vmem>>, vector<8x32xf32>,
    } else {
    }
    %cst = arith.constant 0xFF800000 : f32
    %3 = vector.broadcast %cst : f32 to vector<8x1xf32>
    %c0 = arith.constant 0 : index
    %c0_1 = arith.constant 0 : index
    %4 = vector.load %arg9[%c0, %c0_1] : memref<8x1xf32, #tpu.memory_space<vmem>>, vector<8x1xf32>
    tpu.vector_store %arg9[%c0, %c0_1], %3 {strides = array<i32>} : memref<8x1xf32, #tpu.memory_space<vmem>>, vector<8x1xf32>,
    %cst_2 = arith.constant 0.000000e+00 : f32
    %5 = vector.broadcast %cst_2 : f32 to vector<8x1xf32>
    %c0_3 = arith.constant 0 : index
    %c0_4 = arith.constant 0 : index
    %6 = vector.load %arg10[%c0_3, %c0_4] : memref<8x1xf32, #tpu.memory_space<vmem>>, vector<8x1xf32>
    tpu.vector_store %arg10[%c0_3, %c0_4], %5 {strides = array<i32>} : memref<8x1xf32, #tpu.memory_space<vmem>>, vector<8x1xf32>,
    %cst_5 = arith.constant 0.000000e+00 : f32
    %7 = vector.broadcast %cst_5 : f32 to vector<8x8xf32>
    %c0_6 = arith.constant 0 : index
    %c0_7 = arith.constant 0 : index
    %8 = vector.load %arg11[%c0_6, %c0_7] : memref<8x8xf32, #tpu.memory_space<vmem>>, vector<8x8xf32>
    tpu.vector_store %arg11[%c0_6, %c0_7], %7 {strides = array<i32>} : memref<8x8xf32, #tpu.memory_space<vmem>>, vector<8x8xf32>,
    %c0_8 = arith.constant 0 : index
    %c0_9 = arith.constant 0 : index
    %c0_10 = arith.constant 0 : index
    %c0_11 = arith.constant 0 : index
    %c0_12 = arith.constant 0 : index
    %9 = vector.load %arg3[%c0_8, %c0_9, %c0_10, %c0_11, %c0_12] : memref<1x1x1x8x8xbf16, #tpu.memory_space<vmem>>, vector<1x1x1x8x8xbf16>
    %10 = vector.shape_cast %9 : vector<1x1x1x8x8xbf16> to vector<8x8xbf16>
    %c0_i32_13 = arith.constant 0 : i32
    %c0_i32_14 = arith.constant 0 : i32
    %11 = arith.subi %arg1, %c0_i32_14 : i32
    %12 = arith.addi %c0_i32_14, %11 : i32
    %c1_i32 = arith.constant 1 : i32
    scf.for %arg13 = %c0_i32_14 to %12 step %c1_i32  : i32 {
      %c8_i32_52 = arith.constant 8 : i32
      %67 = arith.muli %arg13, %c8_i32_52 : i32
      %68 = tpu.assume_multiple %67, 8 : i32
      %c0_53 = arith.constant 0 : index
      %c0_54 = arith.constant 0 : index
      %c0_55 = arith.constant 0 : index
      %69 = arith.index_cast %68 : i32 to index
      %c0_56 = arith.constant 0 : index
      %70 = vector.load %arg4[%c0_53, %c0_54, %c0_55, %69, %c0_56] : memref<1x1x1x16x8xbf16, #tpu.memory_space<vmem>>, vector<1x1x1x8x8xbf16>
      %71 = vector.shape_cast %70 : vector<1x1x1x8x8xbf16> to vector<8x8xbf16>
      %c0_57 = arith.constant 0 : index
      %c0_58 = arith.constant 0 : index
      %c0_59 = arith.constant 0 : index
      %72 = arith.index_cast %68 : i32 to index
      %c0_60 = arith.constant 0 : index
      %73 = vector.load %arg5[%c0_57, %c0_58, %c0_59, %72, %c0_60] : memref<1x1x1x16x8xbf16, #tpu.memory_space<vmem>>, vector<1x1x1x8x8xbf16>
      %74 = vector.shape_cast %73 : vector<1x1x1x8x8xbf16> to vector<8x8xbf16>
      %75 = tpu.transpose %71, [1, 0] : vector<8x8xbf16> -> vector<8x8xbf16>
      %cst_61 = arith.constant dense<0.000000e+00> : vector<8x8xf32>
      %76 = tpu.matmul %10, %75, %cst_61 {dimension_numbers = #tpu.dot_dimension_numbers<[1], [0], [0], [1], [0, 0, 1, 1], [], []>} : vector<8x8xbf16>, vector<8x8xbf16>, vector<8x8xf32> -> vector<8x8xf32>
      %c0_62 = arith.constant 0 : index
      %c0_63 = arith.constant 0 : index
      %77 = vector.load %arg9[%c0_62, %c0_63] : memref<8x1xf32, #tpu.memory_space<vmem>>, vector<8x1xf32>
      %cst_64 = arith.constant dense<0xFF800000> : vector<8xf32>
      %78 = vector.multi_reduction <maximumf>, %76, %cst_64 [1] : vector<8x8xf32> to vector<8xf32>
      %79 = vector.shape_cast %78 : vector<8xf32> to vector<8x1xf32>
      %80 = arith.maximumf %77, %79 : vector<8x1xf32>
      %81 = arith.subf %77, %80 : vector<8x1xf32>
      %82 = math.exp %81 : vector<8x1xf32>
      %83 = vector.broadcast %80 : vector<8x1xf32> to vector<8x8xf32>
      %84 = arith.subf %76, %83 : vector<8x8xf32>
      %85 = math.exp %84 : vector<8x8xf32>
      %c0_65 = arith.constant 0 : index
      %c0_66 = arith.constant 0 : index
      %86 = vector.load %arg10[%c0_65, %c0_66] : memref<8x1xf32, #tpu.memory_space<vmem>>, vector<8x1xf32>
      %87 = arith.mulf %82, %86 : vector<8x1xf32>
      %cst_67 = arith.constant dense<0.000000e+00> : vector<8xf32>
      %88 = vector.multi_reduction <add>, %85, %cst_67 [1] : vector<8x8xf32> to vector<8xf32>
      %89 = vector.shape_cast %88 : vector<8xf32> to vector<8x1xf32>
      %90 = arith.addf %87, %89 : vector<8x1xf32>
      %c0_68 = arith.constant 0 : index
      %c0_69 = arith.constant 0 : index
      %91 = vector.load %arg10[%c0_68, %c0_69] : memref<8x1xf32, #tpu.memory_space<vmem>>, vector<8x1xf32>
      tpu.vector_store %arg10[%c0_68, %c0_69], %90 {strides = array<i32>} : memref<8x1xf32, #tpu.memory_space<vmem>>, vector<8x1xf32>,
      %c0_70 = arith.constant 0 : index
      %c0_71 = arith.constant 0 : index
      %92 = vector.load %arg11[%c0_70, %c0_71] : memref<8x8xf32, #tpu.memory_space<vmem>>, vector<8x8xf32>
      %93 = vector.broadcast %82 : vector<8x1xf32> to vector<8x8xf32>
      %94 = arith.mulf %93, %92 : vector<8x8xf32>
      %95 = arith.truncf %85 : vector<8x8xf32> to vector<8x8xbf16>
      %cst_72 = arith.constant dense<0.000000e+00> : vector<8x8xf32>
      %96 = tpu.matmul %95, %74, %cst_72 {dimension_numbers = #tpu.dot_dimension_numbers<[1], [0], [0], [1], [0, 0, 1, 1], [], []>} : vector<8x8xbf16>, vector<8x8xbf16>, vector<8x8xf32> -> vector<8x8xf32>
      %97 = arith.addf %94, %96 : vector<8x8xf32>
      %c0_73 = arith.constant 0 : index
      %c0_74 = arith.constant 0 : index
      %98 = vector.load %arg11[%c0_73, %c0_74] : memref<8x8xf32, #tpu.memory_space<vmem>>, vector<8x8xf32>
      tpu.vector_store %arg11[%c0_73, %c0_74], %97 {strides = array<i32>} : memref<8x8xf32, #tpu.memory_space<vmem>>, vector<8x8xf32>,
      %c0_75 = arith.constant 0 : index
      %c0_76 = arith.constant 0 : index
      %99 = vector.load %arg9[%c0_75, %c0_76] : memref<8x1xf32, #tpu.memory_space<vmem>>, vector<8x1xf32>
      tpu.vector_store %arg9[%c0_75, %c0_76], %80 {strides = array<i32>} : memref<8x1xf32, #tpu.memory_space<vmem>>, vector<8x1xf32>,
    }
    %c8_i32 = arith.constant 8 : i32
    %13 = arith.muli %arg1, %c8_i32 : i32
    %14 = tpu.assume_multiple %13, 8 : i32
    %c0_15 = arith.constant 0 : index
    %c0_16 = arith.constant 0 : index
    %c0_17 = arith.constant 0 : index
    %15 = arith.index_cast %14 : i32 to index
    %c0_18 = arith.constant 0 : index
    %16 = vector.load %arg4[%c0_15, %c0_16, %c0_17, %15, %c0_18] : memref<1x1x1x16x8xbf16, #tpu.memory_space<vmem>>, vector<1x1x1x8x8xbf16>
    %17 = vector.shape_cast %16 : vector<1x1x1x8x8xbf16> to vector<8x8xbf16>
    %c0_19 = arith.constant 0 : index
    %c0_20 = arith.constant 0 : index
    %c0_21 = arith.constant 0 : index
    %18 = arith.index_cast %14 : i32 to index
    %c0_22 = arith.constant 0 : index
    %19 = vector.load %arg5[%c0_19, %c0_20, %c0_21, %18, %c0_22] : memref<1x1x1x16x8xbf16, #tpu.memory_space<vmem>>, vector<1x1x1x8x8xbf16>
    %20 = vector.shape_cast %19 : vector<1x1x1x8x8xbf16> to vector<8x8xbf16>
    %21 = tpu.transpose %17, [1, 0] : vector<8x8xbf16> -> vector<8x8xbf16>
    %cst_23 = arith.constant dense<0.000000e+00> : vector<8x8xf32>
    %22 = tpu.matmul %10, %21, %cst_23 {dimension_numbers = #tpu.dot_dimension_numbers<[1], [0], [0], [1], [0, 0, 1, 1], [], []>} : vector<8x8xbf16>, vector<8x8xbf16>, vector<8x8xf32> -> vector<8x8xf32>
    %23 = tpu.iota {dimensions = array<i32: 0>} : vector<8x8xi32>
    %24 = tpu.iota {dimensions = array<i32: 1>} : vector<8x8xi32>
    %25 = arith.cmpi sge, %23, %24 : vector<8x8xi32>
    %cst_24 = arith.constant 0xFF800000 : f32
    %26 = vector.broadcast %cst_24 : f32 to vector<8x8xf32>
    %27 = arith.select %25, %22, %26 : vector<8x8xi1>, vector<8x8xf32>
    %c0_25 = arith.constant 0 : index
    %c0_26 = arith.constant 0 : index
    %28 = vector.load %arg9[%c0_25, %c0_26] : memref<8x1xf32, #tpu.memory_space<vmem>>, vector<8x1xf32>
    %cst_27 = arith.constant dense<0xFF800000> : vector<8xf32>
    %29 = vector.multi_reduction <maximumf>, %27, %cst_27 [1] : vector<8x8xf32> to vector<8xf32>
    %30 = vector.shape_cast %29 : vector<8xf32> to vector<8x1xf32>
    %31 = arith.maximumf %28, %30 : vector<8x1xf32>
    %32 = arith.subf %28, %31 : vector<8x1xf32>
    %33 = math.exp %32 : vector<8x1xf32>
    %34 = vector.broadcast %31 : vector<8x1xf32> to vector<8x8xf32>
    %35 = arith.subf %27, %34 : vector<8x8xf32>
    %36 = math.exp %35 : vector<8x8xf32>
    %c0_28 = arith.constant 0 : index
    %c0_29 = arith.constant 0 : index
    %37 = vector.load %arg10[%c0_28, %c0_29] : memref<8x1xf32, #tpu.memory_space<vmem>>, vector<8x1xf32>
    %38 = arith.mulf %33, %37 : vector<8x1xf32>
    %cst_30 = arith.constant dense<0.000000e+00> : vector<8xf32>
    %39 = vector.multi_reduction <add>, %36, %cst_30 [1] : vector<8x8xf32> to vector<8xf32>
    %40 = vector.shape_cast %39 : vector<8xf32> to vector<8x1xf32>
    %41 = arith.addf %38, %40 : vector<8x1xf32>
    %c0_31 = arith.constant 0 : index
    %c0_32 = arith.constant 0 : index
    %42 = vector.load %arg10[%c0_31, %c0_32] : memref<8x1xf32, #tpu.memory_space<vmem>>, vector<8x1xf32>
    tpu.vector_store %arg10[%c0_31, %c0_32], %41 {strides = array<i32>} : memref<8x1xf32, #tpu.memory_space<vmem>>, vector<8x1xf32>,
    %c0_33 = arith.constant 0 : index
    %c0_34 = arith.constant 0 : index
    %43 = vector.load %arg11[%c0_33, %c0_34] : memref<8x8xf32, #tpu.memory_space<vmem>>, vector<8x8xf32>
    %44 = vector.broadcast %33 : vector<8x1xf32> to vector<8x8xf32>
    %45 = arith.mulf %44, %43 : vector<8x8xf32>
    %46 = arith.truncf %36 : vector<8x8xf32> to vector<8x8xbf16>
    %cst_35 = arith.constant dense<0.000000e+00> : vector<8x8xf32>
    %47 = tpu.matmul %46, %20, %cst_35 {dimension_numbers = #tpu.dot_dimension_numbers<[1], [0], [0], [1], [0, 0, 1, 1], [], []>} : vector<8x8xbf16>, vector<8x8xbf16>, vector<8x8xf32> -> vector<8x8xf32>
    %48 = arith.addf %45, %47 : vector<8x8xf32>
    %c0_36 = arith.constant 0 : index
    %c0_37 = arith.constant 0 : index
    %49 = vector.load %arg11[%c0_36, %c0_37] : memref<8x8xf32, #tpu.memory_space<vmem>>, vector<8x8xf32>
    tpu.vector_store %arg11[%c0_36, %c0_37], %48 {strides = array<i32>} : memref<8x8xf32, #tpu.memory_space<vmem>>, vector<8x8xf32>,
    %c0_38 = arith.constant 0 : index
    %c0_39 = arith.constant 0 : index
    %50 = vector.load %arg9[%c0_38, %c0_39] : memref<8x1xf32, #tpu.memory_space<vmem>>, vector<8x1xf32>
    tpu.vector_store %arg9[%c0_38, %c0_39], %31 {strides = array<i32>} : memref<8x1xf32, #tpu.memory_space<vmem>>, vector<8x1xf32>,
    %c0_40 = arith.constant 0 : index
    %c0_41 = arith.constant 0 : index
    %51 = vector.load %arg11[%c0_40, %c0_41] : memref<8x8xf32, #tpu.memory_space<vmem>>, vector<8x8xf32>
    %c0_42 = arith.constant 0 : index
    %c0_43 = arith.constant 0 : index
    %52 = vector.load %arg10[%c0_42, %c0_43] : memref<8x1xf32, #tpu.memory_space<vmem>>, vector<8x1xf32>
    %53 = tpu.reciprocal %52 {approx = true} : vector<8x1xf32> -> vector<8x1xf32>
    %54 = vector.broadcast %53 : vector<8x1xf32> to vector<8x8xf32>
    %55 = arith.mulf %51, %54 : vector<8x8xf32>
    %56 = arith.index_cast %arg2 : i32 to index
    %c0_44 = arith.constant 0 : index
    %c0_45 = arith.constant 0 : index
    %57 = vector.load %arg6[%56, %c0_44, %c0_45] : memref<4x8x32xbf16, #tpu.memory_space<vmem>>, vector<1x8x32xbf16>
    %58 = vector.shape_cast %57 : vector<1x8x32xbf16> to vector<8x32xbf16>
    %c0_46 = arith.constant 0 : index
    %c0_47 = arith.constant 0 : index
    %59 = vector.load %arg12[%c0_46, %c0_47] : memref<8x32xf32, #tpu.memory_space<vmem>>, vector<8x32xf32>
    %60 = arith.truncf %55 : vector<8x8xf32> to vector<8x8xbf16>
    %cst_48 = arith.constant dense<0.000000e+00> : vector<8x32xf32>
    %61 = tpu.matmul %60, %58, %cst_48 {dimension_numbers = #tpu.dot_dimension_numbers<[1], [0], [0], [1], [0, 0, 1, 1], [], []>} : vector<8x8xbf16>, vector<8x32xbf16>, vector<8x32xf32> -> vector<8x32xf32>
    %62 = arith.addf %59, %61 : vector<8x32xf32>
    %c0_49 = arith.constant 0 : index
    %c0_50 = arith.constant 0 : index
    %63 = vector.load %arg12[%c0_49, %c0_50] : memref<8x32xf32, #tpu.memory_space<vmem>>, vector<8x32xf32>
    tpu.vector_store %arg12[%c0_49, %c0_50], %62 {strides = array<i32>} : memref<8x32xf32, #tpu.memory_space<vmem>>, vector<8x32xf32>,
    %c3_i32 = arith.constant 3 : i32
    %64 = arith.cmpi eq, %arg2, %c3_i32 : i32
    %65 = arith.extui %64 : i1 to i32
    %c0_i32_51 = arith.constant 0 : i32
    %66 = arith.cmpi ne, %65, %c0_i32_51 : i32
    scf.if %66 {
      %c0_52 = arith.constant 0 : index
      %c0_53 = arith.constant 0 : index
      %67 = vector.load %arg12[%c0_52, %c0_53] : memref<8x32xf32, #tpu.memory_space<vmem>>, vector<8x32xf32>
      %c0_54 = arith.constant 0 : index
      %c0_55 = arith.constant 0 : index
      %c0_56 = arith.constant 0 : index
      %68 = vector.load %arg8[%c0_54, %c0_55, %c0_56] : memref<1x8x32xf32, #tpu.memory_space<vmem>>, vector<1x8x32xf32>
      %69 = vector.shape_cast %68 : vector<1x8x32xf32> to vector<8x32xf32>
      %70 = vector.shape_cast %67 : vector<8x32xf32> to vector<1x8x32xf32>
      tpu.vector_store %arg8[%c0_54, %c0_55, %c0_56], %70 {strides = array<i32>} : memref<1x8x32xf32, #tpu.memory_space<vmem>>, vector<1x8x32xf32>,
    } else {
    }
    return
  }
  func.func @transform_0(%arg0: i32, %arg1: i32, %arg2: i32) -> (i32, i32, i32, i32, i32) {
    %c0_i32 = arith.constant 0 : i32
    %c0_i32_0 = arith.constant 0 : i32
    %c0_i32_1 = arith.constant 0 : i32
    return %c0_i32, %arg0, %arg2, %arg1, %c0_i32_0 : i32, i32, i32, i32, i32
  }
  func.func @transform_1(%arg0: i32, %arg1: i32, %arg2: i32) -> (i32, i32, i32, i32, i32) {
    %c1_i32 = arith.constant 1 : i32
    %c0_i32 = arith.constant 0 : i32
    %c0_i32_0 = arith.constant 0 : i32
    %c0_i32_1 = arith.constant 0 : i32
    return %c1_i32, %arg0, %arg2, %c0_i32, %c0_i32_0 : i32, i32, i32, i32, i32
  }
  func.func @transform_2(%arg0: i32, %arg1: i32, %arg2: i32) -> (i32, i32, i32, i32, i32) {
    %c2_i32 = arith.constant 2 : i32
    %c0_i32 = arith.constant 0 : i32
    %c0_i32_0 = arith.constant 0 : i32
    %c0_i32_1 = arith.constant 0 : i32
    return %c2_i32, %arg0, %arg2, %c0_i32, %c0_i32_0 : i32, i32, i32, i32, i32
  }
  func.func @transform_3(%arg0: i32, %arg1: i32, %arg2: i32) -> (i32, i32, i32) {
    %c0_i32 = arith.constant 0 : i32
    %c0_i32_0 = arith.constant 0 : i32
    %c0_i32_1 = arith.constant 0 : i32
    %c0_i32_2 = arith.constant 0 : i32
    return %c0_i32, %c0_i32_0, %c0_i32_1 : i32, i32, i32
  }
  func.func @transform_4(%arg0: i32, %arg1: i32, %arg2: i32) -> (i32, i32) {
    %c0_i32 = arith.constant 0 : i32
    %c0_i32_0 = arith.constant 0 : i32
    %c0_i32_1 = arith.constant 0 : i32
    return %c0_i32, %c0_i32_0 : i32, i32
  }
  func.func @transform_5(%arg0: i32, %arg1: i32, %arg2: i32) -> (i32, i32, i32) {
    %c0_i32 = arith.constant 0 : i32
    %c0_i32_0 = arith.constant 0 : i32
    return %arg0, %arg1, %c0_i32 : i32, i32, i32
  }
}

</mosaic_0001>

<bundles_post_ra>
// kernel: causal_self_attention.2
= control target key start
LH: loop header
LB: loop body
LE: loop exit
PB: predicated region body
PF: predicated region fallthrough
CT: control target
= control target key end

     0   :  { %s580_s12 = smov 0   ;;  %s582_s13 = smov 0   ;;  %s622_s0 = inlined_call_operand.vmem [shape: bf16[2,16,32], index: 0, kind: input, shape index: {}]   ;;  %s623_s1 = inlined_call_operand.vmem [shape: bf16[32,96], index: 1, kind: input, shape index: {}]   ;;  %s624_s2 = inlined_call_operand.vmem [shape: f32[1,96], index: 2, kind: input, shape index: {}]   ;;  %s625_s3 = inlined_call_operand.vmem [shape: bf16[2,16,96], index: 3, kind: output, shape index: {}]  }
   0x1   :  { %s584_s14 = smov 0  }
   0x2 LB: > { %s32_s15 = sadd.s32 1, %s552_s13  ;;  %p476_p0 = scmp.ge.s32.totalorder %s556_s14, 1  ;;  %s556_s14 = sphi %s584_s14, %s13_s14   ;;  %s552_s13 = sphi %s582_s13, %s627_s13   ;;  %s548_s12 = sphi %s580_s12, %s626_s12  }
   0x3   : > { %p34_p1 = scmp.ge.s32.totalorder %s32_s15, 2  ;;  %p184_p2 = scmp.lt.s32.totalorder %s556_s14, 3 }
   0x5   : > { %s629_s15 = smov (%p34_p1, %s32_s15), 0  ;;  %p185_p3 = pnand %p476_p0, %p184_p2 }
   0x6   : > { %v531_v0 = vld [vmem:[%s623_s1] sm:$0xff] (!%p185_p3)   ;;  %v558_v1 = vmov (!%p185_p3), 0.0   ;;  %v532_v2 = vld [vmem:[%s623_s1 + $0x8] sm:$0xff] (!%p185_p3)   ;;  %vm559_vm0 = vmmov (!%p185_p3), 0   ;;  %p227_p4 = scmp.lt.s32.totalorder (!%p185_p3), %s548_s12, 1  ;;  %vm287_vm1 = vcmask (!%p185_p3), 261120  }
   0x7   : > { %188 = sbr.rel (%p185_p3) target bundleno = 237 (0xed), region = 32  ;;  %497 = vmatprep.subr.bf16.mxu0 (!%p185_p3), %v558_v1  ;;  %501 = vmatprep.mubr.msk.bf16.mxu0 (!%p185_p3), %vm559_vm0, %v558_v1  ;;  %v481_v4 = vld [vmem:[%s624_s2] ss:$0 sm:$0xff] (!%p185_p3)  ;;  %vm340_vm2 = vcmask (!%p185_p3), 781312  }
   0x8   : > { %498 = vmatpush3.bf16.msra.mxu0 (!%p185_p3), %v531_v0 }
   0x9   : > { %499 = vmatprep.subr.bf16.mxu0 (!%p185_p3), %v558_v1 }
   0xc   : > { %500 = vmatpush3.bf16.msra.mxu0 (!%p185_p3), %v532_v2 }
   0xe   : > { %s631_s12 = smov (!%p227_p4, %s548_s12), 1 }
   0xf   : > { %s490_s20 = sshll.u32 %s631_s12, 3 }
  0x10   : > { %s234_s23 = scalar_lea.vmem %s622_s0, %s490_s20  ;;  %s254_s28 = scalar_lea.vmem %s625_s3, %s490_s20 }
  0x11   : > { %v533_v3 = vld [vmem:[%s234_s23] sm:$0xff]  }
  0x12   : > { %502 = vmatmul.mubr.msk.bf16.vlgmr.msra.gmra.mrb[0].mxu0 %vm287_vm1, %v533_v3 }
  0xe5   : > { %v325_v5 = vpop.f32.mrb[0].mxu0 }
  0xe6   : > { %v326_v6 = vadd.f32 %v481_v4, %v325_v5  ;;  %v503_v7 = vpop.f32.mrb[1].mxu0 }
  0xe7   : > { %v328_v8 = vpop.f32.mrb[2].mxu0 }
  0xe8   : > { %v492_v9 = vpack.c.bf16 %v326_v6, %v326_v6  ;;  %v329_v10 = vadd.f32 %v481_v4, %v328_v8  ;;  %v504_v11 = vpop.f32.mrb[3].mxu0 }
  0xea   : > { %341 = vst.msk [vmem:[%s254_s28] sm:$0xf] %vm340_vm2, %v492_v9  ;;  %v493_v12 = vpack.c.bf16 %v329_v10, %v329_v10 }
  0xec   : > { %342 = vst.msk [vmem:[%s254_s28 + $0x4] sm:$0xf] %vm340_vm2, %v493_v12 }
  0xed PF: > { %s13_s14 = sadd.s32 1, %s556_s14   ;;  %s626_s12 = smov %s552_s13 }
  0xee   : > { %p10_p5 = scmp.ge.s32.totalorder %s13_s14, 4   ;;  %s627_s13 = smov %s629_s15 }
  0xf0   :  { %12 = sbr.rel (!%p10_p5) target bundleno = 2 (0x2), region = 68 }

// kernel: causal_self_attention.3
= control target key start
LH: loop header
LB: loop body
LE: loop exit
PB: predicated region body
PF: predicated region fallthrough
CT: control target
= control target key end

     0   :  { %10 = vsyncpa [#allocation7], 0  ;;  %s1479_s0 = inlined_call_operand.vmem [shape: bf16[3,2,4,16,8], index: 0, kind: input, shape index: {}, may-alias: {0,1,2}]   ;;  %s1480_s1 = inlined_call_operand.vmem [shape: bf16[3,2,4,16,8], index: 1, kind: input, shape index: {}, may-alias: {0,1,2}]   ;;  %s1481_s2 = inlined_call_operand.vmem [shape: bf16[3,2,4,16,8], index: 2, kind: input, shape index: {}, may-alias: {0,1,2}]   ;;  %s1482_s3 = inlined_call_operand.vmem [shape: bf16[4,8,32], index: 3, kind: input, shape index: {}]   ;;  %s1483_s4 = inlined_call_operand.vmem [shape: f32[1,32], index: 4, kind: input, shape index: {}]   ;;  %s1484_s5 = inlined_call_operand.hbm [shape: f32[2,16,32], index: 5, kind: output, shape index: {}]  }
   0x1   :  { %12 = vsyncpa [#allocation7 + $0x1], 0  ;;  %s1243_s18 = smov 0   ;;  %s1245_s19 = smov 0  }
   0x2   :  { %s1247_s20 = smov 0   ;;  %s1249_s21 = smov 0  }
   0x3   :  { %s1251_s22 = smov 0   ;;  %s1253_s23 = smov 0  }
   0x4   :  { %s1255_s24 = smov 0   ;;  %s1257_s25 = smov 0  }
   0x5   :  { %s1259_s26 = smov 0   ;;  %s1261_s27 = smov 0  }
   0x6 LB: > { %1496 = sst [smem:[#allocation9_spill]] %s1163_s18  ;;  %s889_s28 = sadd.s32 4294967295, %s1199_s27   ;;  %s1199_s27 = sphi %s1261_s27, %s18_s27   ;;  %s1195_s26 = sphi %s1259_s26, %s1520_s26   ;;  %s1191_s25 = sphi %s1257_s25, %s1519_s25   ;;  %s1187_s24 = sphi %s1255_s24, %s1518_s24   ;;  %s1183_s23 = sphi %s1253_s23, %s1517_s23   ;;  %s1179_s22 = sphi %s1251_s22, %s1516_s22   ;;  %s1175_s21 = sphi %s1249_s21, %s1515_s21   ;;  %s1171_s20 = sphi %s1247_s20, %s1514_s20   ;;  %s1167_s19 = sphi %s1245_s19, %s1522_s19   ;;  %s1163_s18 = sphi %s1243_s18, %s1521_s18  }
   0x7   : > { %1497 = sst [smem:[#allocation10_spill]] %s1171_s20  ;;  %s890_s29 = sadd.s32 4294967294, %s1199_s27  }
   0x8   : > { %1498 = sst [smem:[#allocation11_spill]] %s1187_s24  ;;  %s30_s30 = sadd.s32 1, %s1187_s24 }
   0x9   : > { %1499 = sst [smem:[#allocation12_spill]] %s1191_s25  ;;  %p31_p0 = scmp.ge.s32.totalorder %s30_s30, 4 }
   0xa   : > { %1500 = sst [smem:[#allocation13_spill]] %s1195_s26  ;;  %s33_s6 = sadd.s32 1, %s1191_s25 }
   0xb   : > { %1501 = sst [smem:[#allocation14_spill]] %s1199_s27  ;;  %s37_s7 = sadd.s32 1, %s1195_s26 }
   0xc   : > { %p184_p1 = scmp.ne.s32.totalorder %s1171_s20, %s1167_s19  ;;  %s1524_s30 = smov (%p31_p0, %s30_s30), 0 }
   0xd   : > { %1502 = sst [smem:[#allocation15_spill]] %s1524_s30  ;;  %s1526_s6 = smov (!%p31_p0, %s33_s6), %s1191_s25 }
   0xe   : > { %p185_p2 = scmp.eq.s32.totalorder %s889_s28, 15  ;;  %p190_p3 = scmp.ne.s32.totalorder %s1167_s19, %s1163_s18 }
   0xf   : > { %p35_p4 = scmp.ge.s32.totalorder %s1526_s6, 2  ;;  %p191_p5 = scmp.eq.s32.totalorder %s890_s29, 15 }
  0x10   : > { %p1305_p6 = por %p185_p2, %p184_p1  ;;  %p893_p8 = scmp.ge.s32.totalorder %s1199_s27, 1 }
  0x11   : > { %s1528_s6 = smov (%p35_p4, %s1526_s6), 0  ;;  %s1530_s7 = smov (!%p35_p4, %s37_s7), %s1195_s26 }
  0x12   : > { %1504 = sst [smem:[#allocation16_spill]] %s1528_s6  ;;  %p1312_p7 = por %p191_p5, %p190_p3 }
  0x13   : > { %p39_p9 = scmp.ge.s32.totalorder %s1530_s7, 2  ;;  %p256_p10 = scmp.lt.s32.totalorder %s1199_s27, 17 }
  0x14   : > { %s1505_s9 = scalar_select %p1312_p7, 1, 0 }
  0x15   : > { %s170_s10 = ssub.s32 %s1191_s25, %s1528_s6  ;;  %s1532_s7 = smov (%p39_p9, %s1530_s7), 0 }
  0x16   : > { %1506 = sst [smem:[#allocation17_spill]] %s1505_s9  ;;  %p257_p11 = pnand %p893_p8, %p256_p10 }
  0x17   : > { %1507 = sst [smem:[#allocation18_spill]] %s1532_s7  ;;  %s169_s11 = ssub.s32 %s1195_s26, %s1532_s7 }
  0x18   : > { %s171_s12 = sor.u32 %s170_s10, %s169_s11  ;;  %s174_s13 = sadd.s32 1, %s1171_s20 }
  0x19   : > { %p172_p12 = scmp.eq.s32.totalorder %s171_s12, 0  ;;  %260 = sbr.rel (%p257_p11) target bundleno = 1846 (0x736), region = 40 }
  0x1a   : > { %s1490_s15 = sand.u32 (!%p257_p11), 1, %s1167_s19   ;;  %p311_p13 = scmp.lt.s32.totalorder (!%p257_p11), %s1183_s23, 1 }
  0x1b   : > { %s1326_s14 = scalar_select %p172_p12, %s1171_s20, %s174_s13  }
  0x1c   : > { %s1332_s16 = sshll.u32 (!%p257_p11), %s1490_s15, 3  ;;  %p313_p0 = scmp.lt.s32.totalorder (!%p257_p11), %s1175_s21, 3 }
  0x1d   : > { %1508 = sst [smem:[#allocation19_spill]] %s1326_s14  ;;  %p315_p1 = scmp.lt.s32.totalorder (!%p257_p11), %s1179_s22, 1 }
  0x1e   : > { %p904_p2 = scmp.ne.s32.totalorder (!%p257_p11), %s1175_s21, 0 }
  0x20   : > { %s312_s17 = scalar_select %p311_p13, %s1183_s23, 1 }
  0x21   : > { %s314_s28 = scalar_select %p313_p0, %s1175_s21, 3 }
  0x22   : > { %s316_s29 = scalar_select %p315_p1, %s1179_s22, 1 }
  0x23   : > { %s895_s10 = sshll.u32 %s314_s28, 1  ;;  %s896_s11 = sshll.u32 %s312_s17, 3  ;;  %v905_v0 = vld [vmem:[%s1483_s4] ss:$0 sm:$0xff] (!%p904_p2)  ;;  %vm355_vm0 = vcmask (!%p904_p2), 261120  }
  0x24   : > { %s318_s12 = sadd.s32 %s895_s10, %s316_s29  ;;  %s800_s13 = sadd.s32 %s896_s11, %s895_s10  ;;  %356 = vst.msk [vmem:[#allocation5] sm:$0xff] (!%p904_p2), %vm355_vm0, %v905_v0 }
  0x25   : > { %s320_s7 = sadd.s32 %s896_s11, %s318_s12  ;;  %s900_s6 = sshll.u32 %s800_s13, 2 }
  0x26   : > { %s897_s30 = sshll.u32 %s320_s7, 2  ;;  %s1342_s24 = scalar_lea.vmem %s1480_s1, %s900_s6 }
  0x27   : > { %s322_s20 = scalar_lea.vmem %s1479_s0, %s897_s30  ;;  %s1350_s27 = scalar_lea.vmem %s1481_s2, %s900_s6 }
  0x28   : > { %s310_s17 = scalar_lea.vmem [#allocation6], %s1332_s16  ;;  %347 = sbr.rel (%p904_p2) target bundleno = 47 (0x2f), region = 44 }
  0x2f PF: > { %vm357_vm1 = vcmask 7168   ;;  %vm360_vm2 = vcmask 64512   ;;  %v1357_v1 = vld [vmem:[%s322_s20] sm:$0xf]  ;;  %v1205_v2 = vmov -inf   ;;  %v1206_v3 = vmov 0.0  }
  0x30   : > { %358 = vst.msk [vmem:[#allocation2] sm:$0xff] %vm357_vm1, %v1205_v2  ;;  %359 = vst.msk [vmem:[#allocation3] sm:$0xff] %vm357_vm1, %v1206_v3  ;;  %p906_p3 = scmp.le.s32.totalorder %s1179_s22, 0 }
  0x31   : > { %361 = vst.msk [vmem:[#allocation4] sm:$0xff] %vm360_vm2, %v1206_v3  ;;  %s1365_s18 = smov (!%p906_p3), 0  }
  0x32   : > { %836 = sbr.rel (%p906_p3) target bundleno = 787 (0x313), region = 95 }
  0x39 LB: >> { %v1207_v4 = vmov 0.0   ;;  %vm1208_vm3 = vmmov 0   ;;  %s907_s20 = sshll.u32 %s1203_s18, 3  ;;  %v1209_v12 = vmov 0   ;;  %v424_v13 = vld [vmem:[#allocation2] sm:$0xff]  ;;  %vm458_vm4 = vcmask 1043456   ;;  %s1203_s18 = sphi %s1365_s18, %s366_s18  }
  0x3a   : >> { %939 = vmatprep.subr.bf16.mxu0 %v1207_v4  ;;  %941 = vmatprep.mubr.msk.bf16.mxu0 %vm1208_vm3, %v1207_v4  ;;  %s370_s25 = sshra.s32 %s907_s20, 3  ;;  %v440_v27 = vld [vmem:[#allocation3] sm:$0xff]  ;;  %v447_v31 = vld [vmem:[#allocation4] sm:$0xff]  ;;  %s366_s18 = sadd.s32 1, %s1203_s18  }
  0x3b   : >> { %945 = vmatprep.subr.bf16.mxu1 %v1207_v4  ;;  %947 = vmatprep.mubr.msk.bf16.mxu1 %vm1208_vm3, %v1207_v4  ;;  %s908_s26 = sshll.u32 %s370_s25, 2  ;;  %p365_p4 = scmp.ge.s32.totalorder %s366_s18, %s1179_s22 }
  0x3c   : >> { %s811_s30 = scalar_lea.vmem %s1342_s24, %s908_s26  ;;  %1071 = vset.pattern.permute.xlu0 %v1209_v12  ;;  %1072 = vset.pattern.permute.xlu1 %v1209_v12  ;;  %s814_s6 = scalar_lea.vmem %s1350_s27, %s908_s26 }
  0x3d   : >> { %v909_v5 = vld [vmem:[%s811_s30 + $0x40] sm:$0xf] }
  0x3e   : >> { %v382_v6 = vsel %vm360_vm2, %v909_v5, 0  ;;  %v911_v17 = vld [vmem:[%s814_s6 + $0x80] sm:$0xf] }
  0x3f   : >> { %940 = vmatpush3.bf16.xpose.msra.mxu0 %v382_v6  ;;  %v460_v18 = vsel %vm458_vm4, %v911_v17, 0 }
  0x40   : >> { %946 = vmatpush3.bf16.msra.mxu1 %v460_v18 }
  0x46   : >> { %942 = vmatmul.mubr.msk.bf16.vlgmr.msra.gmra.mrb[0].mxu0 %vm360_vm2, %v1357_v1 }
 0x119   : >> { %v418_v7 = vpop.f32.mrb[0].mxu0 }
 0x11a   : >> { %v943_v8 = vpop.f32.mrb[1].mxu0  ;;  %v425_v9 = vsel %vm360_vm2, %v418_v7, -inf }
 0x11b   : >> { %426 = vmax.xlane.f32.xlu0 %v425_v9  ;;  %v421_v10 = vpop.f32.mrb[2].mxu0 }
 0x11c   : >> { %v944_v11 = vpop.f32.mrb[3].mxu0 }
 0x1a8   : >> { %v427_v14 = vpop.xlane.xlu0 %426 }
 0x1a9   : >> { %v428_v15 = vmax.f32 %v424_v13, %v427_v14 }
 0x1ab   : >> { %v429_v16 = vsub.f32 %v424_v13, %v428_v15  ;;  %504 = vst.msk [vmem:[#allocation2] sm:$0xff] %vm357_vm1, %v428_v15  ;;  %434 = vperm.xlu0 %1071, %v428_v15  }
 0x1ad   : >> { %v430_v25 = vmul.f32 1.442695, %v429_v16 }
 0x22a   : >> { %v435_v19 = vpop.permute.xlu0 %434 }
 0x22b   : >> { %v437_v20 = vsub.f32 %v418_v7, %v435_v19 }
 0x22d   : >> { %v438_v21 = vmul.f32 1.442695, %v437_v20 }
 0x22f   : >> { %1073 = vpow2.f32 %v438_v21 }
 0x230   : >> { %1075 = vpow2.f32 %v430_v25 }
 0x239   : >> { %v1074_v22 = vpop.eup %1073 }
 0x23a   : >> { %v442_v23 = vsel %vm360_vm2, %v1074_v22, 0.0  ;;  %v454_v24 = vpack.c.bf16 %v1074_v22, %v1074_v22  ;;  %v1076_v26 = vpop.eup %1075 }
 0x23b   : >> { %443 = vadd.xlane.f32.xlu1 %v442_v23  ;;  %v441_v28 = vmul.f32 %v1076_v26, %v440_v27 }
 0x23c   : >> { %948 = vmatmul.mubr.msk.bf16.vlgmr.msra.gmra.mrb[0].mxu1 %vm360_vm2, %v454_v24 }
 0x24c   : >> { %450 = vperm.xlu1 %1072, %v1076_v26  }
 0x2c8   : >> { %v444_v29 = vpop.xlane.xlu1 %443 }
 0x2c9   : >> { %v445_v30 = vadd.f32 %v444_v29, %v441_v28 }
 0x2cb   : >> { %446 = vst.msk [vmem:[#allocation3] sm:$0xff] %vm357_vm1, %v445_v30 }
 0x2cc   : >> { %v451_v32 = vpop.permute.xlu1 %450 }
 0x2cd   : >> { %v453_v33 = vmul.f32 %v451_v32, %v447_v31 }
 0x30c   : > { %368 = sbr.rel (!%p365_p4) target bundleno = 57 (0x39), region = 101 }
 0x30f   : >> { %v496_v34 = vpop.f32.mrb[0].mxu1 }
 0x310   : >> { %v502_v35 = vadd.f32 %v496_v34, %v453_v33  ;;  %v949_v36 = vpop.f32.mrb[1].mxu1 }
 0x311   : >> { %v499_v37 = vpop.f32.mrb[2].mxu1 }
 0x312   : >> { %503 = vst.msk [vmem:[#allocation4] sm:$0xff] %vm360_vm2, %v502_v35  ;;  %v950_v38 = vpop.f32.mrb[3].mxu1 }
 0x313 PF: > { %951 = vmatprep.subr.bf16.mxu0 %v1206_v3  ;;  %s914_s9 = sshll.u32 %s1179_s22, 3  ;;  %957 = vmatprep.subr.bf16.mxu1 %v1206_v3  ;;  %vm1210_vm5 = vmmov 0   ;;  %v560_v41 = vlaneseq  ;;  %v1211_v50 = vmov 0   ;;  %v566_v51 = vld [vmem:[#allocation2] sm:$0xff]  ;;  %vm600_vm7 = vcmask 1043456   ;;  %s921_s10 = sshll.u32 %s1175_s21, 2 }
 0x314   : > { %s1389_s14 = sshra.s32 %s914_s9, 3  ;;  %953 = vmatprep.mubr.msk.bf16.mxu0 %vm1210_vm5, %v1206_v3  ;;  %959 = vmatprep.mubr.msk.bf16.mxu1 %vm1210_vm5, %v1206_v3  ;;  %s657_s13 = scalar_lea.vmem %s1482_s3, %s921_s10  ;;  %v582_v4 = vld [vmem:[#allocation3] sm:$0xff]  ;;  %v659_v21 = vld [vmem:[#allocation5] sm:$0xff]  ;;  %vm708_vm8 = vcmask 261120  }
 0x315   : > { %s915_s15 = sshll.u32 %s1389_s14, 2  ;;  %v561_v42 = vshrl.u32 %v560_v41, 7  ;;  %v563_v43 = vand.u32 127, %v560_v41  ;;  %1077 = vset.pattern.permute.xlu0 %v1211_v50  ;;  %1078 = vset.pattern.permute.xlu1 %v1211_v50  ;;  %v658_v60 = vld [vmem:[%s657_s13] sm:$0xf]  ;;  %p923_p5 = scmp.ne.s32.totalorder %s1175_s21, 3 }
 0x316   : > { %s817_s29 = scalar_lea.vmem %s1342_s24, %s915_s15  ;;  %s820_s24 = scalar_lea.vmem %s1350_s27, %s915_s15  ;;  %v665_v62 = vsel %vm600_vm7, %v658_v60, 0 }
 0x317   : > { %v916_v39 = vld [vmem:[%s817_s29 + $0x40] sm:$0xf]  ;;  %vm564_vm6 = vcmp.ge.s32.totalorder %v561_v42, %v563_v43 }
 0x318   : > { %v518_v40 = vsel %vm360_vm2, %v916_v39, 0  ;;  %v918_v55 = vld [vmem:[%s820_s24 + $0x80] sm:$0xf] }
 0x319   : > { %952 = vmatpush3.bf16.xpose.msra.mxu0 %v518_v40  ;;  %v602_v56 = vsel %vm600_vm7, %v918_v55, 0  ;;  %v589_v10 = vld [vmem:[#allocation4] sm:$0xff] }
 0x31a   : > { %958 = vmatpush3.bf16.msra.mxu1 %v602_v56 }
 0x31b   : > { %963 = vmatprep.subr.bf16.mxu1 %v1206_v3 }
 0x320   : > { %954 = vmatmul.mubr.msk.bf16.vlgmr.msra.gmra.mrb[0].mxu0 %vm360_vm2, %v1357_v1 }
 0x3f3   : > { %v554_v44 = vpop.f32.mrb[0].mxu0 }
 0x3f4   : > { %v565_v45 = vsel %vm564_vm6, %v554_v44, -inf  ;;  %v955_v46 = vpop.f32.mrb[1].mxu0 }
 0x3f5   : > { %v557_v47 = vpop.f32.mrb[2].mxu0  ;;  %v567_v48 = vsel %vm360_vm2, %v565_v45, -inf }
 0x3f6   : > { %568 = vmax.xlane.f32.xlu0 %v567_v48  ;;  %v956_v49 = vpop.f32.mrb[3].mxu0 }
 0x483   : > { %v569_v52 = vpop.xlane.xlu0 %568 }
 0x484   : > { %v570_v53 = vmax.f32 %v566_v51, %v569_v52 }
 0x486   : > { %v571_v54 = vsub.f32 %v566_v51, %v570_v53  ;;  %646 = vst.msk [vmem:[#allocation2] sm:$0xff] %vm357_vm1, %v570_v53  ;;  %576 = vperm.xlu0 %1077, %v570_v53  }
 0x488   : > { %v572_v1 = vmul.f32 1.442695, %v571_v54 }
 0x505   : > { %v577_v57 = vpop.permute.xlu0 %576 }
 0x506   : > { %v579_v58 = vsub.f32 %v565_v45, %v577_v57 }
 0x508   : > { %v580_v59 = vmul.f32 1.442695, %v579_v58 }
 0x50a   : > { %1079 = vpow2.f32 %v580_v59 }
 0x50b   : > { %1081 = vpow2.f32 %v572_v1 }
 0x514   : > { %v1080_v61 = vpop.eup %1079 }
 0x515   : > { %v584_v63 = vsel %vm360_vm2, %v1080_v61, 0.0  ;;  %v596_v0 = vpack.c.bf16 %v1080_v61, %v1080_v61  ;;  %v1082_v2 = vpop.eup %1081 }
 0x516   : > { %585 = vadd.xlane.f32.xlu1 %v584_v63  ;;  %v583_v5 = vmul.f32 %v1082_v2, %v582_v4 }
 0x517   : > { %960 = vmatmul.mubr.msk.bf16.vlgmr.msra.gmra.mrb[0].mxu1 %vm360_vm2, %v596_v0 }
 0x518   : > { %964 = vmatpush3.bf16.msra.mxu1 %v665_v62  ;;  %965 = vmatprep.mubr.msk.bf16.mxu1 %vm1210_vm5, %v1206_v3 }
 0x527   : > { %592 = vperm.xlu1 %1078, %v1082_v2  }
 0x5a3   : > { %v586_v6 = vpop.xlane.xlu1 %585 }
 0x5a4   : > { %v587_v7 = vadd.f32 %v586_v6, %v583_v5 }
 0x5a6   : > { %588 = vst.msk [vmem:[#allocation3] sm:$0xff] %vm357_vm1, %v587_v7 }
 0x5a7   : > { %v593_v11 = vpop.permute.xlu1 %592 }
 0x5a8   : > { %v595_v12 = vmul.f32 %v593_v11, %v589_v10 }
 0x5ad   : > { %v648_v8 = vld [vmem:[#allocation3] sm:$0xff] }
 0x5ae   : > { %1083 = vrcp.f32 %v648_v8 }
 0x5b8   : > { %v1084_v9 = vpop.eup %1083 }
 0x5b9   : > { %652 = vperm.xlu1 %1078, %v1084_v9  }
 0x5ea   : > { %v638_v13 = vpop.f32.mrb[0].mxu1 }
 0x5eb   : > { %v644_v14 = vadd.f32 %v638_v13, %v595_v12  ;;  %v961_v15 = vpop.f32.mrb[1].mxu1 }
 0x5ec   : > { %v641_v3 = vpop.f32.mrb[2].mxu1 }
 0x5ed   : > { %645 = vst.msk [vmem:[#allocation4] sm:$0xff] %vm360_vm2, %v644_v14  ;;  %v962_v16 = vpop.f32.mrb[3].mxu1 }
 0x5f4   : > { %v647_v17 = vld [vmem:[#allocation4] sm:$0xff] }
 0x638   : > { %v653_v18 = vpop.permute.xlu1 %652 }
 0x639   : > { %v655_v19 = vmul.f32 %v653_v18, %v647_v17 }
 0x63b   : > { %v660_v20 = vpack.c.bf16 %v655_v19, %v655_v19 }
 0x63d   : > { %966 = vmatmul.mubr.msk.bf16.vlgmr.msra.gmra.mrb[4].mxu1 %vm360_vm2, %v660_v20 }
 0x70d   : > { %713 = sbr.rel (%p923_p5) target bundleno = 1820 (0x71c), region = 55 }
 0x710   : > { %v701_v22 = vpop.f32.mrb[4].mxu1 }
 0x711   : > { %v707_v23 = vadd.f32 %v701_v22, %v659_v21  ;;  %v967_v24 = vpop.f32.mrb[5].mxu1 }
 0x712   : > { %v704_v25 = vpop.f32.mrb[6].mxu1 }
 0x713   : > { %709 = vst.msk [vmem:[#allocation5] sm:$0xff] %vm708_vm8, %v707_v23  ;;  %v968_v26 = vpop.f32.mrb[7].mxu1 }
 0x71a   : > { %v714_v27 = vld [vmem:[#allocation5] sm:$0xff] }
 0x71b   : > { %715 = vst.msk [vmem:[%s310_s17] sm:$0xff] %vm708_vm8, %v714_v27 }
 0x71c PF: > { %s925_s27 = sshll.u32 %s1183_s23, 1  ;;  %s732_s7 = sshll.u32 %s310_s17, 4  ;;  %s1422_s7 = int_to_ptr.vmem [resolvable:$true] %s732_s7 }
 0x71d   : > { %s728_s28 = sadd.s32 %s1179_s22, %s925_s27  ;;  %s1509_s26 = sand.u32 1, %s1167_s19  }
 0x71e   : > { %s926_s18 = sshll.u32 %s728_s28, 7  ;;  %s717_s30 = scalar_lea.sflag [#allocation7], %s1509_s26 }
 0x71f   : > { %s730_s25 = scalar_lea.hbm %s1484_s5, %s926_s18  ;;  %s1085_s6 = scalar_lea.vmem %s1422_s7, 128 }
 0x720   : > { %p1086_p8 = scmp.ne.s32.totalorder %s1422_s7, %s1085_s6  ;;  %s1212_s22 = smov [#allocation6]  }
 0x721   : > { %s1089_s23 = sshll.u32 %s1212_s22, 4  ;;  %s1090_s23 = int_to_ptr.vmem [resolvable:$false] %s1089_s23 }
 0x722   : > { %p1087_p9 = pnand %p1086_p8, %p1305_p6  ;;  %s1091_s16 = scalar_lea.vmem %s1090_s23, 256 }
 0x723   : > { %p1092_p11 = scmp.lt.s32.totalorder %s1422_s7, %s1090_s23  ;;  %p1093_p12 = scmp.lt.s32.totalorder %s1091_s16, %s1085_s6 }
 0x724   : > { %p1088_p10 = pneg %p1087_p9 }
 0x725   : > { %p1094_p13 = por %p1093_p12, %p1092_p11 }
 0x727   : > { %p1095_p0 = pnand %p1094_p13, %p1088_p10 }
 0x729   : > { %1098 = shalt.err (!%p1095_p0)
}
 0x72a   : > { %s1099_s17 = scalar_lea.hbm %s730_s25, 128  ;;  %s1103_s15 = scalar_lea.hbm %s1484_s5, 512 }
 0x72b   : > { %p1100_p1 = scmp.ne.s32.totalorder %s730_s25, %s1099_s17  ;;  %p1104_p4 = scmp.lt.u32.totalorder %s730_s25, %s1484_s5 }
 0x72c   : > { %p1105_p5 = scmp.lt.u32.totalorder %s1103_s15, %s1099_s17  ;;  %p1107_p9 = scmp.lt.u32.totalorder %s1099_s17, %s730_s25 }
 0x72d   : > { %p1101_p2 = pnand %p1100_p1, %p1305_p6 }
 0x72e   : > { %p1106_p8 = por %p1105_p5, %p1104_p4 }
 0x72f   : > { %p1102_p3 = pneg %p1101_p2 }
 0x730   : > { %p1108_p11 = por %p1107_p9, %p1106_p8 }
 0x732   : > { %p1109_p10 = pnand %p1108_p11, %p1102_p3 }
 0x734   : > { %1112 = shalt.err (!%p1109_p10)
}
 0x735   : > { %969 = dma.vmem_to_hbm [thread:$0]  (%p1305_p6), %s1422_s7, 128, %s730_s25, %s717_s30  }
 0x736 PF: > { %s1510_s10 = sld [smem:[#allocation14_spill]]  ;;  %s1511_s11 = sld [smem:[#allocation9_spill]] }
 0x73c   : > { %p975_p12 = scmp.ge.s32.totalorder %s1510_s10, 2  ;;  %s744_s13 = sand.u32 1, %s1511_s11  }
 0x73d   : > { %s745_s27 = scalar_lea.sflag [#allocation7], %s744_s13 }
 0x73e   : > { %p972_p13 = pnand %p975_p12, %p1312_p7 }
 0x740   : > { %1158 = dma.done.wait (!%p972_p13), %s745_s27, 128  }
 0x741   : > { %1160 = vsyncadd (!%p972_p13), %s745_s27, 4294967168  ;;  %s18_s27 = sadd.s32 1, %s1510_s10   ;;  %s1513_s28 = sld [smem:[#allocation10_spill]] }
 0x742   : > { %p15_p0 = scmp.ge.s32.totalorder %s18_s27, 18   ;;  %s1514_s20 = sld [smem:[#allocation19_spill]] }
 0x743   : > { %s1515_s21 = sld [smem:[#allocation11_spill]]  ;;  %s1516_s22 = sld [smem:[#allocation12_spill]] }
 0x744   : > { %s1517_s23 = sld [smem:[#allocation13_spill]]  ;;  %s1518_s24 = sld [smem:[#allocation15_spill]] }
 0x745   : > { %s1519_s25 = sld [smem:[#allocation16_spill]]  ;;  %s1520_s26 = sld [smem:[#allocation18_spill]] }
 0x746   : > { %s1521_s18 = smov %s1167_s19  ;;  %17 = sbr.rel (!%p15_p0) target bundleno = 6 (0x6), region = 112 }
 0x747   : > { %s1522_s19 = smov %s1513_s28 }
 0x74d   :  { %750 = vsyncpa [#allocation7], 1 }
 0x74e   :  { %752 = vsyncpa [#allocation7 + $0x1], 1 }

</bundles_post_ra>
